<compile_context>
chip_gen: v7x
topology: tpu7x:2x2x1
jax: 0.10.0
libtpu: 0.0.40
codegen_flags: <defaults>
</compile_context>

<pallas_src>
import functools

import jax
import jax.numpy as jnp
from jax.experimental import pallas as pl
from jax.experimental.pallas import tpu as pltpu


LANE = 128          # TPU vreg lane width; batch tiles are multiples of this
SUBLANE = 8         # sublane count; class/row padding granularity
NEG_FILL = -1e30    # bias for padded (fake) classes -> they vanish in softmax


def _round_up(a, b):
    return (a + b - 1) // b * b


def _num_tensorcores():
    """Best-effort TensorCore count (2 on v7x, 1 on v5e/v6e).  Falls back to 1."""
    try:
        info = pltpu.get_tpu_info()
        for attr in ("num_cores", "core_count", "num_tensorcores",
                     "tensorcore_count", "cores_per_chip"):
            v = getattr(info, attr, None)
            if isinstance(v, int) and 1 <= v <= 8:
                return v
    except Exception:
        pass
    try:
        v = getattr(jax.devices()[0], "num_cores", None)
        if isinstance(v, int) and 1 <= v <= 8:
            return v
    except Exception:
        pass
    return 1


# ---------------------------------------------------------------------------
# Parameter packing: all layers' [W | b] slabs stacked into ONE padded block.
#   layer i occupies rows [row_off, row_off + out_pad), cols [0, fan_in) for W
#   and col fan_in for the bias.  The FINAL layer's padded class rows keep
#   W = 0 and bias = NEG_FILL so they drop out of log_softmax.
# Returns (packed (R,128) array, meta = tuple of (row_off, out_rows, fan_in)).
# For the final layer out_rows is the 8-padded class count.
# ---------------------------------------------------------------------------
def pack_params(params, matmul_dtype=jnp.float32):
    n_layers = len(params)
    width = _round_up(max(W.shape[1] for W, _ in params) + 1, LANE)   # -> 128
    blocks, meta, row = [], [], 0
    for i, (W, b) in enumerate(params):
        out, fan_in = W.shape
        out_pad = _round_up(out, SUBLANE)
        blk = jnp.zeros((out_pad, width), jnp.float32)
        blk = blk.at[:out, :fan_in].set(W)
        bias_fill = NEG_FILL if i == n_layers - 1 else 0.0
        bias_col = jnp.full((out_pad,), bias_fill, jnp.float32).at[:out].set(b[:, 0])
        blk = blk.at[:, fan_in].set(bias_col)
        blocks.append(blk)
        # final layer: kernel computes all padded rows (full-vreg stores);
        # hidden layers: only the real rows feed the next matmul.
        meta.append((row, out_pad if i == n_layers - 1 else out, fan_in))
        row += out_pad
    packed = jnp.concatenate(blocks, axis=0).astype(matmul_dtype)
    return packed, tuple(meta)


# ---------------------------------------------------------------------------
# Pallas kernel: whole forward pass for one lane-dense batch tile.
#   x_ref : (2, bn)              f32 activations (batch on lanes)
#   p_ref : (R, 128)             packed [W|b] block, grid-invariant resident
#   o_ref : (n_class_pad, bn)    lane-dense, full-sublane unmasked stores
# ---------------------------------------------------------------------------
def _mlp_kernel(x_ref, p_ref, o_ref, *, layer_meta, matmul_dtype):
    n_layers = len(layer_meta)
    h = x_ref[...]                                            # (2, bn) f32
    for i, (row, out_rows, fan_in) in enumerate(layer_meta):
        w = p_ref[row:row + out_rows, 0:fan_in]               # (out, in), static slice
        b = p_ref[row:row + out_rows, fan_in:fan_in + 1].astype(jnp.float32)
        rhs = h if h.dtype == matmul_dtype else h.astype(matmul_dtype)
        acc = jnp.dot(w, rhs, preferred_element_type=jnp.float32) + b
        if i < n_layers - 1:
            h = jnp.maximum(acc, 0.0)                         # ReLU
        else:
            # log_softmax over the class axis (sublane axis 0); padded class
            # rows carry bias NEG_FILL so exp() contributes ~0 to the sum.
            m = jnp.max(acc, axis=0, keepdims=True)
            s = acc - m
            lse = jnp.log(jnp.sum(jnp.exp(s), axis=0, keepdims=True))
            h = s - lse
    o_ref[...] = h.astype(o_ref.dtype)


# ---------------------------------------------------------------------------
# Wrapper.  Jit this together with the caller so the pad/transpose relayout
# fuses with surrounding XLA ops (see __main__).
# ---------------------------------------------------------------------------
def dxw_mclass_forward(x, packed_params, *, layer_meta, n_class,
                       block_n=8192, matmul_dtype=jnp.float32, num_cores=None):
    """x: (N, 2) f32.  packed_params/layer_meta: from pack_params().
    Returns (N, n_class) f32 log-probabilities."""
    N, in_features = x.shape
    n_class_pad = layer_meta[-1][1]

    # ---- batch tiling: as few grid steps as possible; split only when there
    # are multiple TensorCores AND enough batch to feed them -----------------
    nc = num_cores if num_cores is not None else _num_tensorcores()
    n_pad = _round_up(N, LANE)
    target_blocks = nc if (nc > 1 and n_pad >= nc * LANE) else 1
    bn = _round_up(pl.cdiv(n_pad, target_blocks), LANE)
    bn = min(bn, _round_up(block_n, LANE))          # cap the tile (VMEM budget)
    n_blocks = pl.cdiv(n_pad, bn)
    n_pad = n_blocks * bn
    grid = (n_blocks,)

    # Feature-major: batch on the lane axis.  Padded rows are zeros; they run
    # through log_softmax producing finite garbage and are sliced off below.
    x_t = jnp.pad(x, ((0, n_pad - N), (0, 0))).T             # (2, n_pad)

    # ---- VMEM budget: double-buffered I/O tiles + in-kernel activation
    # copies (~a dozen (32, bn) f32 live values) + the resident param block.
    max_width = max(max(m[1], m[2]) for m in layer_meta)
    io_bytes = 2 * 4 * bn * (in_features + n_class_pad)       # 2 buffers each
    act_bytes = 12 * max_width * bn * 4
    packed_bytes = 2 * packed_params.size * packed_params.dtype.itemsize
    vmem_bytes = int(io_bytes + act_bytes + packed_bytes + (2 << 20))
    vmem_bytes = min(max(vmem_bytes, 16 << 20), 64 << 20)     # <= v7x physical

    kernel = functools.partial(_mlp_kernel, layer_meta=layer_meta,
                               matmul_dtype=matmul_dtype)

    out_t = pl.pallas_call(
        kernel,
        out_shape=jax.ShapeDtypeStruct((n_class_pad, n_pad), jnp.float32),
        grid_spec=pltpu.PrefetchScalarGridSpec(
            num_scalar_prefetch=0,
            grid=grid,
            in_specs=[
                pl.BlockSpec((in_features, bn), lambda i: (0, i)),
                pl.BlockSpec(packed_params.shape, lambda i: (0, 0)),  # resident
            ],
            out_specs=pl.BlockSpec((n_class_pad, bn), lambda i: (0, i)),
        ),
        compiler_params=pltpu.CompilerParams(
            dimension_semantics=("parallel",),
            vmem_limit_bytes=vmem_bytes,
        ),
    )(x_t, packed_params)

    # Drop padded classes and padded batch rows; back to (batch, class).
    return out_t[:n_class].T[:N]


# ---------------------------------------------------------------------------
# Deterministic parameters mirroring nn.Linear for
# DxW_MClassNet(d=3, w=32, n_class=3): Linear(2,32), Linear(32,32), Linear(32,3)
# PyTorch layout: W (out_features, in_features), b (out_features, 1).
# ---------------------------------------------------------------------------
def init_params(key, d=3, w=32, n_class=3):
    assert d >= 2
    dims = [2] + [w] * (d - 1) + [n_class]
    params = []
    for li in range(d):
        fan_in, fan_out = dims[li], dims[li + 1]
        key, kw, kb = jax.random.split(key, 3)
        bound = 1.0 / jnp.sqrt(jnp.float32(fan_in))
        W = jax.random.uniform(kw, (fan_out, fan_in), jnp.float32, -bound, bound)
        b = jax.random.uniform(kb, (fan_out, 1), jnp.float32, -bound, bound)
        params.append((W, b))
    return params


# ---------------------------------------------------------------------------
# Pure-JAX reference (same math, f32 everywhere).
# ---------------------------------------------------------------------------
def reference_forward(x, params, n_class):
    h = x
    for i, (W, b) in enumerate(params):
        h = h @ W.T + b[:, 0]
        if i < len(params) - 1:
            h = jnp.maximum(h, 0.0)
        else:
            h = jax.nn.log_softmax(h, axis=1)
    return h


if __name__ == "__main__":
    d, w, n_class = 3, 32, 3

    key = jax.random.PRNGKey(0)
    key, kx, kx2 = jax.random.split(key, 3)
    params = init_params(key, d=d, w=w, n_class=n_class)
    packed, meta = pack_params(params)          # f32 params, packed once

    # jit the wrapper so the pad/transpose relayout fuses with the kernel call.
    fwd = jax.jit(functools.partial(dxw_mclass_forward,
                                    layer_meta=meta, n_class=n_class))

    # ---- small demo batch (like a few points of the 101x101 Gif_Mclass grid)
    N = 16
    x = jax.random.uniform(kx, (N, 2), jnp.float32)
    out = jax.block_until_ready(fwd(x, packed))
    ref = reference_forward(x, params, n_class)
    assert out.shape == (N, n_class)
    assert jnp.allclose(out, ref, atol=1e-4, rtol=1e-4), "Pallas kernel mismatch (single tile)"

    # ---- multi-step grid path (small tile cap forces grid > 1)
    fwd_multi = jax.jit(functools.partial(dxw_mclass_forward, layer_meta=meta,
                                          n_class=n_class, block_n=256))
    N2 = 1000
    x2 = jax.random.uniform(kx2, (N2, 2), jnp.float32)
    out2 = jax.block_until_ready(fwd_multi(x2, packed))
    ref2 = reference_forward(x2, params, n_class)
    assert out2.shape == (N2, n_class)
    assert jnp.allclose(out2, ref2, atol=1e-4, rtol=1e-4), "Pallas kernel mismatch (multi tile)"

    print("KERNEL_OK")
</pallas_src>

<mosaic_0001>
module attributes {stable_mosaic.version = 11 : i64} {
  func.func @_mlp_kernel(%arg0: i32, %arg1: memref<2x128xf32, #tpu.memory_space<vmem>>, %arg2: memref<72x128xf32, #tpu.memory_space<vmem>>, %arg3: memref<8x128xf32, #tpu.memory_space<vmem>>) attributes {dimension_semantics = [#tpu.dimension_semantics<parallel>], iteration_bounds = array<i64: 1>, scalar_prefetch = 0 : i64, scratch_operands = 0 : i64, tpu.core_type = #tpu.core_type<tc>, window_params = [{transform_indices = @transform_0, window_bounds = array<i64: 2, 128>}, {pipeline_mode = #tpu.pipeline_mode<synchronous>, transform_indices = @transform_1, window_bounds = array<i64: 72, 128>}, {transform_indices = @transform_2, window_bounds = array<i64: 8, 128>}]} {
    %c0 = arith.constant 0 : index
    %c0_0 = arith.constant 0 : index
    %0 = vector.load %arg1[%c0, %c0_0] : memref<2x128xf32, #tpu.memory_space<vmem>>, vector<2x128xf32>
    %c0_1 = arith.constant 0 : index
    %c0_2 = arith.constant 0 : index
    %1 = vector.load %arg2[%c0_1, %c0_2] : memref<72x128xf32, #tpu.memory_space<vmem>>, vector<32x2xf32>
    %c0_3 = arith.constant 0 : index
    %c2 = arith.constant 2 : index
    %2 = vector.load %arg2[%c0_3, %c2] : memref<72x128xf32, #tpu.memory_space<vmem>>, vector<32x1xf32>
    %cst = arith.constant dense<0.000000e+00> : vector<32x128xf32>
    %3 = tpu.matmul %1, %0, %cst {dimension_numbers = #tpu.dot_dimension_numbers<[1], [0], [0], [1], [0, 0, 1, 1], [], []>} : vector<32x2xf32>, vector<2x128xf32>, vector<32x128xf32> -> vector<32x128xf32>
    %4 = vector.broadcast %2 : vector<32x1xf32> to vector<32x128xf32>
    %5 = arith.addf %3, %4 : vector<32x128xf32>
    %cst_4 = arith.constant 0.000000e+00 : f32
    %6 = vector.broadcast %cst_4 : f32 to vector<32x128xf32>
    %7 = arith.maximumf %5, %6 : vector<32x128xf32>
    %c32 = arith.constant 32 : index
    %c0_5 = arith.constant 0 : index
    %8 = vector.load %arg2[%c32, %c0_5] : memref<72x128xf32, #tpu.memory_space<vmem>>, vector<32x32xf32>
    %c32_6 = arith.constant 32 : index
    %c32_7 = arith.constant 32 : index
    %9 = vector.load %arg2[%c32_6, %c32_7] : memref<72x128xf32, #tpu.memory_space<vmem>>, vector<32x1xf32>
    %cst_8 = arith.constant dense<0.000000e+00> : vector<32x128xf32>
    %10 = tpu.matmul %8, %7, %cst_8 {dimension_numbers = #tpu.dot_dimension_numbers<[1], [0], [0], [1], [0, 0, 1, 1], [], []>} : vector<32x32xf32>, vector<32x128xf32>, vector<32x128xf32> -> vector<32x128xf32>
    %11 = vector.broadcast %9 : vector<32x1xf32> to vector<32x128xf32>
    %12 = arith.addf %10, %11 : vector<32x128xf32>
    %cst_9 = arith.constant 0.000000e+00 : f32
    %13 = vector.broadcast %cst_9 : f32 to vector<32x128xf32>
    %14 = arith.maximumf %12, %13 : vector<32x128xf32>
    %c64 = arith.constant 64 : index
    %c0_10 = arith.constant 0 : index
    %15 = vector.load %arg2[%c64, %c0_10] : memref<72x128xf32, #tpu.memory_space<vmem>>, vector<8x32xf32>
    %c64_11 = arith.constant 64 : index
    %c32_12 = arith.constant 32 : index
    %16 = vector.load %arg2[%c64_11, %c32_12] : memref<72x128xf32, #tpu.memory_space<vmem>>, vector<8x1xf32>
    %cst_13 = arith.constant dense<0.000000e+00> : vector<8x128xf32>
    %17 = tpu.matmul %15, %14, %cst_13 {dimension_numbers = #tpu.dot_dimension_numbers<[1], [0], [0], [1], [0, 0, 1, 1], [], []>} : vector<8x32xf32>, vector<32x128xf32>, vector<8x128xf32> -> vector<8x128xf32>
    %18 = vector.broadcast %16 : vector<8x1xf32> to vector<8x128xf32>
    %19 = arith.addf %17, %18 : vector<8x128xf32>
    %cst_14 = arith.constant dense<0xFF800000> : vector<128xf32>
    %20 = vector.multi_reduction <maximumf>, %19, %cst_14 [0] : vector<8x128xf32> to vector<128xf32>
    %21 = vector.shape_cast %20 : vector<128xf32> to vector<1x128xf32>
    %22 = vector.broadcast %21 : vector<1x128xf32> to vector<8x128xf32>
    %23 = arith.subf %19, %22 : vector<8x128xf32>
    %24 = math.exp %23 : vector<8x128xf32>
    %cst_15 = arith.constant dense<0.000000e+00> : vector<128xf32>
    %25 = vector.multi_reduction <add>, %24, %cst_15 [0] : vector<8x128xf32> to vector<128xf32>
    %26 = vector.shape_cast %25 : vector<128xf32> to vector<1x128xf32>
    %27 = math.log %26 : vector<1x128xf32>
    %28 = vector.broadcast %27 : vector<1x128xf32> to vector<8x128xf32>
    %29 = arith.subf %23, %28 : vector<8x128xf32>
    %c0_16 = arith.constant 0 : index
    %c0_17 = arith.constant 0 : index
    %30 = vector.load %arg3[%c0_16, %c0_17] : memref<8x128xf32, #tpu.memory_space<vmem>>, vector<8x128xf32>
    tpu.vector_store %arg3[%c0_16, %c0_17], %29 {strides = array<i32>} : memref<8x128xf32, #tpu.memory_space<vmem>>, vector<8x128xf32>,
    return
  }
  func.func @transform_0(%arg0: i32) -> (i32, i32) {
    %c0_i32 = arith.constant 0 : i32
    %c0_i32_0 = arith.constant 0 : i32
    return %c0_i32, %arg0 : i32, i32
  }
  func.func @transform_1(%arg0: i32) -> (i32, i32) {
    %c0_i32 = arith.constant 0 : i32
    %c0_i32_0 = arith.constant 0 : i32
    %c0_i32_1 = arith.constant 0 : i32
    return %c0_i32, %c0_i32_0 : i32, i32
  }
  func.func @transform_2(%arg0: i32) -> (i32, i32) {
    %c0_i32 = arith.constant 0 : i32
    %c0_i32_0 = arith.constant 0 : i32
    return %c0_i32, %arg0 : i32, i32
  }
}

</mosaic_0001>

<bundles_post_ra>
// kernel: dxw_mclass_forward.1
= control target key start
LH: loop header
LB: loop body
LE: loop exit
PB: predicated region body
PF: predicated region fallthrough
CT: control target
= control target key end

     0   :  { %7 = vsyncpa [#allocation3], 0  ;;  %s491_s9 = smov [#allocation2]   ;;  %s537_s0 = inlined_call_operand.vmem [shape: f32[2,128], index: 0, kind: input, shape index: {}]   ;;  %s538_s1 = inlined_call_operand.hbm [shape: f32[72,128], index: 1, kind: input, shape index: {}]   ;;  %s539_s2 = inlined_call_operand.vmem [shape: f32[8,128], index: 2, kind: output, shape index: {}]  }
   0x1   :  { %s15_s10 = sshll.u32 %s491_s9, 4  ;;  %s467_s13 = scalar_lea.hbm %s538_s1, 1152  ;;  %s16_s10 = int_to_ptr.vmem [resolvable:$true] %s15_s10 }
   0x2   :  { %p468_p0 = scmp.ne.s32.totalorder %s538_s1, %s467_s13  ;;  %p471_p1 = scmp.lt.u32.totalorder %s467_s13, %s538_s1 }
   0x4   :  { %p473_p2 = pnand %p471_p1, %p468_p0 }
   0x6   :  { %476 = shalt.err (!%p473_p2)
}
   0x7   :  { %s477_s18 = scalar_lea.vmem %s16_s10, 1152  ;;  %p482_p4 = scmp.lt.s32.totalorder %s16_s10, %s16_s10 }
   0x8   :  { %p478_p3 = scmp.ne.s32.totalorder %s16_s10, %s477_s18  ;;  %p483_p5 = scmp.lt.s32.totalorder %s477_s18, %s477_s18 }
   0xa   :  { %p484_p6 = por %p483_p5, %p482_p4 }
   0xc   :  { %p485_p7 = pnand %p484_p6, %p478_p3 }
   0xe   :  { %488 = shalt.err (!%p485_p7)
}
   0xf   :  { %s492_s19 = smov 128   ;;  %s493_s20 = smov 8  }
  0x10   :  { %21 = dma.hbm_to_vmem [thread:$0]  %s538_s1, 1152, %s16_s10, [#allocation3], %s492_s19, %s492_s19, %s493_s20  }
  0x11   :  { %489 = dma.done.wait [#allocation3], 1152  }
  0x12   :  { %490 = vsyncadd [#allocation3], 4294966144  ;;  %v494_v0 = vmov 2   ;;  %vm59_vm0 = vcmask 1041408   ;;  %vm50_vm1 = vcmask 15360   ;;  %v26_v2 = vld [vmem:[#allocation2] sm:$0xff] }
  0x13   :  { %459 = vset.pattern.permute.xlu0 %v494_v0  ;;  %460 = vset.pattern.permute.xlu1 %v494_v0  ;;  %v25_v1 = vld [vmem:[%s537_s0] sm:$0x3]  ;;  %v27_v3 = vld [vmem:[#allocation2 + $0x8] sm:$0xff]  ;;  %v28_v4 = vld [vmem:[#allocation2 + $0x10] sm:$0xff]  ;;  %vm176_vm2 = vcmask 261120   ;;  %v495_v8 = vmov 32  }
  0x14   :  { %404 = vmatprep.subr.msk.mxu0 %vm59_vm0, %v25_v1  ;;  %406 = vmatprep.mubr.msk.f32.mxu0 %vm50_vm1, %v26_v2  ;;  %v29_v5 = vld [vmem:[#allocation2 + $0x18] sm:$0xff]  ;;  %v152_v6 = vld [vmem:[#allocation2 + $0x20] sm:$0xff]  ;;  %v153_v7 = vld [vmem:[#allocation2 + $0x28] sm:$0xff]  ;;  %v496_v30 = vmov 0.0|0.0   ;;  %vm497_vm3 = vmmov 0   ;;  %v498_v31 = vmov 0.0  }
  0x15   :  { %405 = vmatpush3.msk.msra.mxu0 %vm59_vm0, %v25_v1  ;;  %32 = vperm.xlu0 %459, %v26_v2   ;;  %v154_v9 = vld [vmem:[#allocation2 + $0x30] sm:$0xff]  ;;  %v155_v10 = vld [vmem:[#allocation2 + $0x38] sm:$0xff]  ;;  %v274_v11 = vld [vmem:[#allocation2 + $0x40] sm:$0xff] }
  0x16   :  { %407 = vmatmul.mubr.msk.f32.vlgmr.msra.gmra.mrb[0].mxu0 %vm50_vm1, %v27_v3  ;;  %42 = vperm.xlu1 %460, %v28_v4  }
  0x17   :  { %409 = vmatprep.mubr.msk.f32.mxu0 %vm50_vm1, %v28_v4  ;;  %420 = vmatprep.mubr.msk.f32.mxu1 %vm176_vm2, %v152_v6 }
  0x18   :  { %445 = vmatprep.subr.bf16.mxu0 %v496_v30 }
  0x19   :  { %37 = vperm.xlu0 %459, %v27_v3  }
  0x1a   :  { %410 = vmatmul.mubr.msk.f32.gmra.mrb[2].mxu0 %vm50_vm1, %v29_v5  ;;  %47 = vperm.xlu1 %460, %v29_v5  }
  0x1b   :  { %434 = vmatprep.mubr.msk.f32.mxu0 %vm497_vm3, %v498_v31 }
  0x1d   :  { %461 = vset.pattern.permute.xlu0 %v495_v8 }
  0x1e   :  { %462 = vset.pattern.permute.xlu1 %v495_v8  ;;  %158 = vperm.xlu0 %461, %v152_v6  }
  0x1f   :  { %163 = vperm.xlu1 %462, %v153_v7  }
  0x22   :  { %173 = vperm.xlu0 %461, %v155_v10  }
  0x23   :  { %168 = vperm.xlu1 %462, %v154_v9  }
  0x27   :  { %277 = vperm.xlu1 %462, %v274_v11  }
  0x94   :  { %v33_v12 = vpop.permute.xlu0 %32 }
  0x95   :  { %v43_v13 = vpop.permute.xlu1 %42 }
  0x98   :  { %v38_v14 = vpop.permute.xlu0 %37 }
  0x99   :  { %v48_v20 = vpop.permute.xlu1 %47 }
  0x9d   :  { %v159_v32 = vpop.permute.xlu0 %158 }
  0x9e   :  { %v164_v33 = vpop.permute.xlu1 %163 }
  0xa1   :  { %v174_v39 = vpop.permute.xlu0 %173 }
  0xa2   :  { %v169_v42 = vpop.permute.xlu1 %168 }
  0xa6   :  { %v278_v50 = vpop.permute.xlu1 %277 }
  0xe9   :  { %v408_v15 = vpop.f32.mrb[0].mxu0 }
  0xea   :  { %v135_v16 = vadd.f32 %v408_v15, %v38_v14  ;;  %v129_v17 = vpop.f32.mrb[1].mxu0 }
  0xeb   :  { %v130_v18 = vadd.f32 %v129_v17, %v33_v12 }
  0xec   :  { %v149_v19 = vmax.f32 %v135_v16, 0.0 }
  0xed   :  { %v148_v21 = vmax.f32 %v130_v18, 0.0  ;;  %v411_v22 = vpop.f32.mrb[2].mxu0 }
  0xee   :  { %v145_v23 = vadd.f32 %v411_v22, %v48_v20  ;;  %v139_v24 = vpop.f32.mrb[3].mxu0 }
  0xef   :  { %v140_v25 = vadd.f32 %v139_v24, %v43_v13  ;;  %v437_v26 = vpack.c.bf16 %v149_v19, %v148_v21 }
  0xf0   :  { %v151_v27 = vmax.f32 %v145_v23, 0.0 }
  0xf1   :  { %v150_v28 = vmax.f32 %v140_v25, 0.0  ;;  %438 = vmatprep.subr.bf16.mxu1 %v437_v26 }
  0xf2   :  { %440 = vmatpush3.bf16.msra.mxu1 %v437_v26 }
  0xf3   :  { %v441_v29 = vpack.c.bf16 %v151_v27, %v150_v28 }
  0xf5   :  { %442 = vmatprep.subr.bf16.mxu1 %v441_v29 }
  0xf6   :  { %444 = vmatpush3.bf16.msra.mxu1 %v441_v29 }
  0xf9   :  { %421 = vmatmul.mubr.msk.f32.vlgmr.msra.gmra.mrb[0].mxu1 %vm176_vm2, %v153_v7 }
  0xfa   :  { %423 = vmatprep.mubr.msk.f32.mxu1 %vm176_vm2, %v154_v9 }
  0xfd   :  { %424 = vmatmul.mubr.msk.f32.gmra.mrb[2].mxu1 %vm176_vm2, %v155_v10 }
 0x1cc   :  { %v422_v34 = vpop.f32.mrb[0].mxu1 }
 0x1cd   :  { %v257_v35 = vadd.f32 %v422_v34, %v164_v33  ;;  %v251_v36 = vpop.f32.mrb[1].mxu1 }
 0x1ce   :  { %v252_v37 = vadd.f32 %v251_v36, %v159_v32 }
 0x1cf   :  { %v271_v38 = vmax.f32 %v257_v35, 0.0 }
 0x1d0   :  { %v270_v40 = vmax.f32 %v252_v37, 0.0  ;;  %v425_v41 = vpop.f32.mrb[2].mxu1 }
 0x1d1   :  { %v267_v43 = vadd.f32 %v425_v41, %v174_v39  ;;  %v261_v44 = vpop.f32.mrb[3].mxu1 }
 0x1d2   :  { %v446_v45 = vpack.c.bf16 %v271_v38, %v270_v40  ;;  %v262_v46 = vadd.f32 %v261_v44, %v169_v42 }
 0x1d3   :  { %v273_v47 = vmax.f32 %v267_v43, 0.0 }
 0x1d4   :  { %v272_v48 = vmax.f32 %v262_v46, 0.0  ;;  %447 = vmatpush3.bf16.msra.mxu0 %v446_v45 }
 0x1d5   :  { %448 = vmatprep.subr.bf16.mxu0 %v496_v30 }
 0x1d6   :  { %v449_v49 = vpack.c.bf16 %v273_v47, %v272_v48 }
 0x1d8   :  { %450 = vmatpush3.bf16.msra.mxu0 %v449_v49 }
 0x1db   :  { %435 = vmatmul.mubr.msk.f32.vlgmr.msra.gmra.mrb[4].mxu0 %vm176_vm2, %v274_v11 }
 0x2ae   :  { %v348_v51 = vpop.f32.mrb[4].mxu0 }
 0x2af   :  { %v349_v52 = vadd.f32 %v348_v51, %v278_v50  ;;  %v436_v53 = vpop.f32.mrb[5].mxu0 }
 0x2b1   :  { %v352_v54 = vrot.slane %v349_v52, 4 }
 0x2b3   :  { %v353_v55 = vmax.f32 %v349_v52, %v352_v54 }
 0x2b5   :  { %v354_v56 = vrot.slane %v353_v55, 2 }
 0x2b7   :  { %v355_v57 = vmax.f32 %v353_v55, %v354_v56 }
 0x2b9   :  { %v356_v58 = vrot.slane %v355_v57, 1 }
 0x2bb   :  { %v357_v59 = vmax.f32 %v355_v57, %v356_v58 }
 0x2bd   :  { %v358_v60 = vsub.f32 %v349_v52, %v357_v59 }
 0x2bf   :  { %v359_v61 = vmul.f32 1.442695, %v358_v60 }
 0x2c1   :  { %463 = vpow2.f32 %v359_v61 }
 0x2cb   :  { %v464_v62 = vpop.eup %463 }
 0x2cc   :  { %v361_v63 = vrot.slane %v464_v62, 4 }
 0x2ce   :  { %v362_v0 = vadd.f32 %v464_v62, %v361_v63 }
 0x2d0   :  { %v363_v1 = vrot.slane %v362_v0, 2 }
 0x2d2   :  { %v364_v2 = vadd.f32 %v363_v1, %v362_v0 }
 0x2d4   :  { %v365_v3 = vrot.slane %v364_v2, 1 }
 0x2d6   :  { %v366_v4 = vadd.f32 %v365_v3, %v364_v2 }
 0x2d8   :  { %465 = vlog2.f32 %v366_v4 }
 0x2e2   :  { %v466_v5 = vpop.eup %465 }
 0x2e3   :  { %v368_v6 = vmul.f32 0.6931472, %v466_v5 }
 0x2e5   :  { %v369_v7 = vsub.f32 %v358_v60, %v368_v6 }
 0x2e7   :  { %370 = vst [vmem:[%s539_s2] sm:$0xff] %v369_v7 }
 0x2e8   :  { %375 = vsyncpa [#allocation3], 1 }

</bundles_post_ra>
